<compile_context>
chip_gen: v6e
topology: v6e:2x2x1
jax: 0.10.0
libtpu: 0.0.40
codegen_flags: <defaults>
</compile_context>

<pallas_src>
import functools

import jax
import jax.numpy as jnp
from jax.experimental import pallas as pl
from jax.experimental.pallas import tpu as pltpu

M = 0.25       # margin m
GAMMA = 64.0   # scale gamma


def _circle_loss_kernel(inp_ref, label_ref, out_ref, *, n_true: int, tile_rows: int):
    i = pl.program_id(0)

    x = inp_ref[...].astype(jnp.float32)          # (TN, C), upcast after the DMA
    lab = label_ref[...]                          # (TN, 1) int32
    tn, c = x.shape

    # One-hot mask of the label column per row (replaces gather/scatter).
    col = jax.lax.broadcasted_iota(jnp.int32, (tn, c), 1)
    is_pos = col == lab                           # broadcast of (TN, 1)

    # d        = where(pos, (1+m) - x, x + m)       a = relu(d)   (detach: same fwd value)
    # x - sigma = where(pos, x - (1-m), x - m) = where(pos, -(d-2m), d-2m)
    # logits   = gamma * a * (x - sigma)
    #          = where(pos, -gamma, gamma) * (a * (d - 2m))
    d = jnp.where(is_pos, (1.0 + M) - x, x + M)
    a = jnp.maximum(d, 0.0)
    t = a * (d - 2.0 * M)
    logits = jnp.where(is_pos, -GAMMA, GAMMA) * t  # (TN, C)

    # Row-wise cross-entropy with integer labels (stable log-sum-exp form).
    mx = jnp.max(logits, axis=-1, keepdims=True)
    z = logits - mx
    lse = jnp.log(jnp.sum(jnp.exp(z), axis=-1, keepdims=True))           # (TN, 1)
    z_true = jnp.sum(jnp.where(is_pos, z, 0.0), axis=-1, keepdims=True)  # (TN, 1)
    per_row = lse - z_true                        # (TN, 1)

    # Mask padded rows of the (possibly ragged) final tile.
    row = jax.lax.broadcasted_iota(jnp.int32, (tn, 1), 0) + i * tile_rows
    per_row = jnp.where(row < n_true, per_row, 0.0)

    partial = jnp.sum(per_row)                    # scalar partial sum for this tile
    out_ref[...] = jnp.broadcast_to(partial, (1, 8, 128)).astype(jnp.float32)


def _pick_tile_rows(n: int, c: int, itemsize: int,
                    target_bytes: int = 4 << 20,   # ~4 MiB per input buffer
                    cap_bytes: int = 8 << 20,      # hard cap (v7x VMEM headroom)
                    max_rows: int = 4096) -> int:
    """Row-tile size: multiple of 8, ~4 MiB per input buffer, capped at batch."""
    row_bytes = max(1, c * itemsize)
    rows = min(max_rows, target_bytes // row_bytes, cap_bytes // row_bytes)
    rows = max(8, (rows // 8) * 8)
    n_up = ((n + 7) // 8) * 8
    rows = min(rows, n_up)
    # v7x load balance: the "parallel" batch axis shards over 2 TCs, so prefer
    # >= 8 grid steps -- but never shrink the tile below ~1 MiB (roofline is
    # already ~saturated there) or below 8 rows.
    while rows > 8 and (n_up + rows - 1) // rows < 8 and (rows // 2) * row_bytes >= (1 << 20):
        rows = max(8, ((rows // 2) // 8) * 8)
    return rows


def circle_loss(inp: jax.Array, label: jax.Array, *, tile_rows=None) -> jax.Array:
    n, c = inp.shape
    itemsize = jnp.dtype(inp.dtype).itemsize
    tn = tile_rows if tile_rows is not None else _pick_tile_rows(n, c, itemsize)
    num_tiles = (n + tn - 1) // tn
    n_pad = num_tiles * tn

    if n_pad != n:
        inp = jnp.pad(inp, ((0, n_pad - n), (0, 0)))
        label = jnp.pad(label, (0, n_pad - n))
    label2d = label.astype(jnp.int32).reshape(n_pad, 1)

    kernel = functools.partial(_circle_loss_kernel, n_true=n, tile_rows=tn)

    partials = pl.pallas_call(
        kernel,
        out_shape=jax.ShapeDtypeStruct((num_tiles, 8, 128), jnp.float32),
        grid=(num_tiles,),
        in_specs=[
            pl.BlockSpec((tn, c), lambda i: (i, 0)),   # input, native dtype, lane-dense C
            pl.BlockSpec((tn, 1), lambda i: (i, 0)),   # labels (lane-pads to 128; small)
        ],
        out_specs=pl.BlockSpec((1, 8, 128), lambda i: (i, 0, 0)),
        compiler_params=pltpu.CompilerParams(
            dimension_semantics=("parallel",),          # shard row tiles across TCs (v7x)
            vmem_limit_bytes=32 * 1024 * 1024,          # safe on v5e / v6e / v7x
        ),
    )(inp, label2d)

    # Tiny final reduction + mean over the *true* batch size.
    return jnp.sum(partials[:, 0, 0]) / jnp.float32(n)


def circle_loss_ref(inp, label):
    n, c = inp.shape
    onehot = jax.nn.one_hot(label, c, dtype=jnp.bool_)
    a = jnp.where(onehot, jnp.maximum(1.0 + M - inp, 0.0), jnp.maximum(inp + M, 0.0))
    sigma = jnp.where(onehot, 1.0 - M, M)
    logits = a * (inp - sigma) * GAMMA
    logp = jax.nn.log_softmax(logits, axis=-1)
    return -jnp.mean(jnp.sum(jnp.where(onehot, logp, 0.0), axis=-1))


if __name__ == "__main__":
    key = jax.random.PRNGKey(0)
    k1, k2, k3, k4 = jax.random.split(key, 4)

    # Case 1: small single-tile case (batch=8, classes=32), f32.
    inp = jax.random.uniform(k1, (8, 32), jnp.float32, minval=-1.0, maxval=1.0)
    label = jax.random.randint(k2, (8,), 0, 32, dtype=jnp.int32)
    loss = jax.block_until_ready(circle_loss(inp, label))
    ref = jax.block_until_ready(circle_loss_ref(inp, label))
    assert jnp.allclose(loss, ref, rtol=1e-5, atol=1e-5), (loss, ref)

    # Case 2: multi-tile grid with a ragged last tile (batch=37 -> pad 40, TN=8).
    inp2 = jax.random.uniform(k3, (37, 96), jnp.float32, minval=-1.0, maxval=1.0)
    label2 = jax.random.randint(k4, (37,), 0, 96, dtype=jnp.int32)
    loss2 = jax.block_until_ready(circle_loss(inp2, label2, tile_rows=8))
    ref2 = jax.block_until_ready(circle_loss_ref(inp2, label2))
    assert jnp.allclose(loss2, ref2, rtol=1e-5, atol=1e-5), (loss2, ref2)

    # Case 3: bf16 input -- upcast happens inside the kernel after the DMA.
    inp3 = inp.astype(jnp.bfloat16)
    loss3 = jax.block_until_ready(circle_loss(inp3, label))
    ref3 = jax.block_until_ready(circle_loss_ref(inp3.astype(jnp.float32), label))
    assert jnp.allclose(loss3, ref3, rtol=1e-4, atol=1e-4), (loss3, ref3)

    # Case 4: auto tile picker on a larger batch (exercises the 4 MiB target
    # and the >=8-tile load-balance shrink).
    k5, k6 = jax.random.split(k4)
    inp4 = jax.random.uniform(k5, (4096, 256), jnp.float32, minval=-1.0, maxval=1.0)
    label4 = jax.random.randint(k6, (4096,), 0, 256, dtype=jnp.int32)
    loss4 = jax.block_until_ready(circle_loss(inp4, label4))
    ref4 = jax.block_until_ready(circle_loss_ref(inp4, label4))
    assert jnp.allclose(loss4, ref4, rtol=1e-5, atol=1e-5), (loss4, ref4)

    print("KERNEL_OK")
</pallas_src>

<mosaic_0001>
module attributes {stable_mosaic.version = 11 : i64} {
  func.func @_circle_loss_kernel(%arg0: i32, %arg1: memref<8x32xf32, #tpu.memory_space<vmem>>, %arg2: memref<8x1xi32, #tpu.memory_space<vmem>>, %arg3: memref<1x8x128xf32, #tpu.memory_space<vmem>>) attributes {dimension_semantics = [#tpu.dimension_semantics<parallel>], iteration_bounds = array<i64: 1>, scalar_prefetch = 0 : i64, scratch_operands = 0 : i64, tpu.core_type = #tpu.core_type<tc>, window_params = [{transform_indices = @transform_0, window_bounds = array<i64: 8, 32>}, {transform_indices = @transform_1, window_bounds = array<i64: 8, 1>}, {transform_indices = @transform_2, window_bounds = array<i64: 1, 8, 128>}]} {
    %c0 = arith.constant 0 : index
    %c0_0 = arith.constant 0 : index
    %0 = vector.load %arg1[%c0, %c0_0] : memref<8x32xf32, #tpu.memory_space<vmem>>, vector<8x32xf32>
    %c0_1 = arith.constant 0 : index
    %c0_2 = arith.constant 0 : index
    %1 = vector.load %arg2[%c0_1, %c0_2] : memref<8x1xi32, #tpu.memory_space<vmem>>, vector<8x1xi32>
    %2 = tpu.iota {dimensions = array<i32: 1>} : vector<8x32xi32>
    %3 = vector.broadcast %1 : vector<8x1xi32> to vector<8x32xi32>
    %4 = arith.cmpi eq, %2, %3 : vector<8x32xi32>
    %cst = arith.constant 1.250000e+00 : f32
    %5 = vector.broadcast %cst : f32 to vector<8x32xf32>
    %6 = arith.subf %5, %0 : vector<8x32xf32>
    %cst_3 = arith.constant 2.500000e-01 : f32
    %7 = vector.broadcast %cst_3 : f32 to vector<8x32xf32>
    %8 = arith.addf %0, %7 : vector<8x32xf32>
    %9 = arith.select %4, %6, %8 : vector<8x32xi1>, vector<8x32xf32>
    %cst_4 = arith.constant 0.000000e+00 : f32
    %10 = vector.broadcast %cst_4 : f32 to vector<8x32xf32>
    %11 = arith.maximumf %9, %10 : vector<8x32xf32>
    %cst_5 = arith.constant 5.000000e-01 : f32
    %12 = vector.broadcast %cst_5 : f32 to vector<8x32xf32>
    %13 = arith.subf %9, %12 : vector<8x32xf32>
    %14 = arith.mulf %11, %13 : vector<8x32xf32>
    %cst_6 = arith.constant -6.400000e+01 : f32
    %cst_7 = arith.constant 6.400000e+01 : f32
    %15 = vector.broadcast %cst_6 : f32 to vector<8x32xf32>
    %16 = vector.broadcast %cst_7 : f32 to vector<8x32xf32>
    %17 = arith.select %4, %15, %16 : vector<8x32xi1>, vector<8x32xf32>
    %18 = arith.mulf %17, %14 : vector<8x32xf32>
    %cst_8 = arith.constant dense<0xFF800000> : vector<8xf32>
    %19 = vector.multi_reduction <maximumf>, %18, %cst_8 [1] : vector<8x32xf32> to vector<8xf32>
    %20 = vector.shape_cast %19 : vector<8xf32> to vector<8x1xf32>
    %21 = vector.broadcast %20 : vector<8x1xf32> to vector<8x32xf32>
    %22 = arith.subf %18, %21 : vector<8x32xf32>
    %23 = math.exp %22 : vector<8x32xf32>
    %cst_9 = arith.constant dense<0.000000e+00> : vector<8xf32>
    %24 = vector.multi_reduction <add>, %23, %cst_9 [1] : vector<8x32xf32> to vector<8xf32>
    %25 = vector.shape_cast %24 : vector<8xf32> to vector<8x1xf32>
    %26 = math.log %25 : vector<8x1xf32>
    %cst_10 = arith.constant 0.000000e+00 : f32
    %27 = vector.broadcast %cst_10 : f32 to vector<8x32xf32>
    %28 = arith.select %4, %22, %27 : vector<8x32xi1>, vector<8x32xf32>
    %cst_11 = arith.constant dense<0.000000e+00> : vector<8xf32>
    %29 = vector.multi_reduction <add>, %28, %cst_11 [1] : vector<8x32xf32> to vector<8xf32>
    %30 = vector.shape_cast %29 : vector<8xf32> to vector<8x1xf32>
    %31 = arith.subf %26, %30 : vector<8x1xf32>
    %32 = tpu.iota {dimensions = array<i32: 0>} : vector<8x1xi32>
    %c8_i32 = arith.constant 8 : i32
    %33 = arith.muli %arg0, %c8_i32 : i32
    %34 = vector.broadcast %33 : i32 to vector<8x1xi32>
    %35 = arith.addi %32, %34 : vector<8x1xi32>
    %c8_i32_12 = arith.constant 8 : i32
    %36 = vector.broadcast %c8_i32_12 : i32 to vector<8x1xi32>
    %37 = arith.cmpi slt, %35, %36 : vector<8x1xi32>
    %cst_13 = arith.constant 0.000000e+00 : f32
    %38 = vector.broadcast %cst_13 : f32 to vector<8x1xf32>
    %39 = arith.select %37, %31, %38 : vector<8x1xi1>, vector<8x1xf32>
    %40 = vector.shape_cast %39 : vector<8x1xf32> to vector<1x8x1xf32>
    %cst_14 = arith.constant dense<0.000000e+00> : vector<1xf32>
    %41 = vector.multi_reduction <add>, %40, %cst_14 [1, 2] : vector<1x8x1xf32> to vector<1xf32>
    %42 = vector.shape_cast %41 : vector<1xf32> to vector<1x1x1xf32>
    %43 = vector.extract %42[0, 0, 0] : f32 from vector<1x1x1xf32>
    %44 = vector.broadcast %43 : f32 to vector<1x8x128xf32>
    %c0_15 = arith.constant 0 : index
    %c0_16 = arith.constant 0 : index
    %c0_17 = arith.constant 0 : index
    %45 = vector.load %arg3[%c0_15, %c0_16, %c0_17] : memref<1x8x128xf32, #tpu.memory_space<vmem>>, vector<1x8x128xf32>
    tpu.vector_store %arg3[%c0_15, %c0_16, %c0_17], %44 {strides = array<i32>} : memref<1x8x128xf32, #tpu.memory_space<vmem>>, vector<1x8x128xf32>,
    return
  }
  func.func @transform_0(%arg0: i32) -> (i32, i32) {
    %c0_i32 = arith.constant 0 : i32
    %c0_i32_0 = arith.constant 0 : i32
    return %arg0, %c0_i32 : i32, i32
  }
  func.func @transform_1(%arg0: i32) -> (i32, i32) {
    %c0_i32 = arith.constant 0 : i32
    %c0_i32_0 = arith.constant 0 : i32
    return %arg0, %c0_i32 : i32, i32
  }
  func.func @transform_2(%arg0: i32) -> (i32, i32, i32) {
    %c0_i32 = arith.constant 0 : i32
    %c0_i32_0 = arith.constant 0 : i32
    %c0_i32_1 = arith.constant 0 : i32
    return %arg0, %c0_i32, %c0_i32_0 : i32, i32, i32
  }
}

</mosaic_0001>

<bundles_post_ra>
// kernel: tpu_custom_call.1
= control target key start
LH: loop header
LB: loop body
LE: loop exit
PB: predicated region body
PF: predicated region fallthrough
CT: control target
= control target key end

     0   :  { %s142_s0 = inlined_call_operand.vmem [shape: f32[8,32], index: 0, kind: input, shape index: {}]   ;;  %s143_s1 = inlined_call_operand.vmem [shape: s32[8,1], index: 1, kind: input, shape index: {}]   ;;  %s144_s2 = inlined_call_operand.hbm [shape: f32[1,8,128], index: 2, kind: output, shape index: {}]  }
   0x1   :  { %v13_v0 = vld [vmem:[%s143_s1] sm:$0xff] }
   0x2   :  { %7 = vsyncpa [#allocation3], 0  ;;  %v112_v1 = vmov 0   ;;  %v14_v2 = vlaneseq  ;;  %v12_v3 = vld [vmem:[%s142_s0] sm:$0xff]  ;;  %v113_v12 = vmov 64.0   ;;  %vm28_vm1 = vcmask 261120  }
   0x3   :  { %85 = vset.pattern.permute.xlu0 %v112_v1  ;;  %v20_v5 = vsub.f32 1.25, %v12_v3  ;;  %v21_v6 = vadd.f32 0.25, %v12_v3  ;;  %vm52_vm2 = vcmask 7168   ;;  %s114_s0 = smov [#allocation2]  }
   0x4   :  { %17 = vperm.xlu0 %85, %v13_v0   ;;  %v15_v4 = vand.u32 127, %v14_v2  ;;  %s71_s1 = sshll.u32 %s114_s0, 4  ;;  %s72_s1 = int_to_ptr.vmem [resolvable:$true] %s71_s1 }
   0x5   :  { %s90_s14 = scalar_lea.vmem %s72_s1, 128  ;;  %p95_p1 = scmp.lt.s32.totalorder %s72_s1, %s72_s1 }
   0x6   :  { %p91_p0 = scmp.ne.s32.totalorder %s72_s1, %s90_s14  ;;  %p96_p2 = scmp.lt.s32.totalorder %s90_s14, %s90_s14 }
   0x8   :  { %p97_p3 = por %p96_p2, %p95_p1 }
   0xa   :  { %p98_p4 = pnand %p97_p3, %p91_p0 }
  0x7f   :  { %v18_v7 = vpop.permute.xlu0 %17 }
  0x80   :  { %vm19_vm0 = vcmp.eq.s32.totalorder %v15_v4, %v18_v7 }
  0x81   :  { %v22_v8 = vsel %vm19_vm0, %v20_v5, %v21_v6  ;;  %v26_v13 = vsel %vm19_vm0, -64.0, %v113_v12 }
  0x82   :  { %v23_v9 = vmax.f32 %v22_v8, 0.0  ;;  %v79_v10 = vadd.f32 -0.5, %v22_v8 }
  0x84   :  { %v25_v11 = vmul.f32 %v79_v10, %v23_v9 }
  0x86   :  { %v27_v14 = vmul.f32 %v26_v13, %v25_v11 }
  0x88   :  { %v29_v15 = vsel %vm28_vm1, %v27_v14, -inf }
  0x89   :  { %30 = vmax.xlane.f32.xlu0 %v29_v15 }
 0x112   :  { %v31_v16 = vpop.xlane.xlu0 %30 }
 0x113   :  { %v32_v17 = vsub.f32 %v27_v14, %v31_v16 }
 0x115   :  { %v33_v18 = vmul.f32 1.442695, %v32_v17  ;;  %v40_v21 = vsel %vm19_vm0, %v32_v17, 0.0 }
 0x116   :  { %v41_v22 = vsel %vm28_vm1, %v40_v21, 0.0 }
 0x117   :  { %86 = vpow2.f32 %v33_v18 }
 0x124   :  { %v87_v19 = vpop.eup %86 }
 0x125   :  { %v35_v20 = vsel %vm28_vm1, %v87_v19, 0.0 }
 0x126   :  { %36 = vadd.xlane.f32.xlu1 %v35_v20 }
 0x12a   :  { %42 = vadd.xlane.f32.xlu1 %v41_v22 }
 0x1af   :  { %v37_v23 = vpop.xlane.xlu1 %36 }
 0x1b0   :  { %88 = vlog2.f32 %v37_v23 }
 0x1b3   :  { %v43_v26 = vpop.xlane.xlu1 %42 }
 0x1bd   :  { %v89_v24 = vpop.eup %88 }
 0x1be   :  { %v39_v25 = vmul.f32 0.6931472, %v89_v24 }
 0x1c0   :  { %v44_v27 = vsub.f32 %v39_v25, %v43_v26 }
 0x1c2   :  { %v53_v28 = vsel %vm52_vm2, %v44_v27, 0.0 }
 0x1c3   :  { %54 = vadd.xlane.f32.xlu1 %v53_v28 }
 0x24c   :  { %v55_v29 = vpop.xlane.xlu1 %54 }
 0x24d   :  { %v56_v30 = vrot.slane %v55_v29, 4 }
 0x24f   :  { %v57_v31 = vadd.f32 %v56_v30, %v55_v29 }
 0x251   :  { %v58_v32 = vrot.slane %v57_v31, 2 }
 0x253   :  { %v59_v33 = vadd.f32 %v58_v32, %v57_v31 }
 0x255   :  { %v60_v34 = vrot.slane %v59_v33, 1 }
 0x257   :  { %v61_v35 = vadd.f32 %v60_v34, %v59_v33 }
 0x259   :  { %80 = vpush %v61_v35 }
 0x28a   :  { %s81_s13 = spop %80 }
 0x28b   :  { %v63_v36 = vstv %s81_s13 }
 0x28c   :  { %64 = vst [vmem:[#allocation2] sm:$0xff] %v63_v36 }
 0x28d   :  { %101 = shalt.err (!%p98_p4)
}
 0x28e   :  { %74 = dma.vmem_to_hbm [thread:$0]  %s72_s1, 128, %s144_s2, [#allocation3]  }
 0x28f   :  { %110 = dma.done.wait [#allocation3], 128  }
 0x290   :  { %111 = vsyncadd [#allocation3], 4294967168 }
 0x291   :  { %78 = vsyncpa [#allocation3], 1 }

</bundles_post_ra>
